<compile_context>
chip_gen: v7x
topology: tpu7x:2x2x1
jax: 0.10.0
libtpu: 0.0.40
codegen_flags: <defaults>
</compile_context>

<pallas_src>
from functools import partial

import jax
import jax.numpy as jnp
from jax.experimental import pallas as pl
from jax.experimental.pallas import tpu as pltpu


def _round_up(n, m):
    return ((n + m - 1) // m) * m


def sentiment_ann_kernel(x_ref, w1_ref, b1_ref, w2_ref, b2_ref, w3_ref, b3_ref,
                         o_ref):
    # Layer 1: Linear(D -> 64) + ReLU.
    # x arrives in its native f32 (single HBM pass); cast to bf16 in-kernel so
    # the MXU runs bf16 x bf16 with f32 accumulation.
    x = x_ref[...].astype(jnp.bfloat16)
    h1 = jnp.dot(x, w1_ref[...],
                 preferred_element_type=jnp.float32) + b1_ref[...]
    h1 = jnp.maximum(h1, 0.0)

    # Dropout(0.2): identity at inference time.
    # TODO(synk): training-mode dropout would need pltpu.prng_seed +
    # pltpu.prng_random_bits; omitted since eval-mode forward() is identity.

    # Layer 2: Linear(64 -> 32) + ReLU (tiny f32 matmul; hides under x DMA).
    h2 = jnp.dot(h1, w2_ref[...],
                 preferred_element_type=jnp.float32) + b2_ref[...]
    h2 = jnp.maximum(h2, 0.0)

    # Layer 3: Linear(32 -> 2), no activation.
    out = jnp.dot(h2, w3_ref[...],
                  preferred_element_type=jnp.float32) + b3_ref[...]
    o_ref[...] = out.astype(o_ref.dtype)


def prepare_params(params):
    """One-time conversion from PyTorch (out,in)/(out,) layout to kernel layout.

    Call this once at load time; do NOT transpose inside the forward path.
    """
    return {
        "w1": jnp.asarray(params["w1"]).T.astype(jnp.bfloat16),   # (D, 64)
        "b1": jnp.asarray(params["b1"]).reshape(1, -1).astype(jnp.float32),
        "w2": jnp.asarray(params["w2"]).T.astype(jnp.float32),    # (64, 32)
        "b2": jnp.asarray(params["b2"]).reshape(1, -1).astype(jnp.float32),
        "w3": jnp.asarray(params["w3"]).T.astype(jnp.float32),    # (32, 2)
        "b3": jnp.asarray(params["b3"]).reshape(1, -1).astype(jnp.float32),
    }


# Conservative scoped-VMEM budget: fits v5e's 16 MiB default (smallest of
# v5e/v6e/v7x) with headroom; avoids needing vmem_limit_bytes overrides.
_VMEM_BUDGET_BYTES = 12 * 1024 * 1024


def _choose_batch_tile(B, D, block_b):
    """Pick the batch tile TB (multiple of 8) from a VMEM budget.

    Per-row VMEM: x double-buffered f32 (2*D*4), the in-kernel bf16 copy of the
    tile (D*2), f32 intermediates h1/h2 (with slack), and the double-buffered
    (TB, 2) f32 output block.
    """
    weight_bytes = 2 * (D * 64 * 2) + 2 * (64 * 32 * 4 + 32 * 2 * 4
                                           + (64 + 32 + 2) * 4)
    per_row = 2 * D * 4 + D * 2 + 2 * (64 + 32) * 4 + 2 * 2 * 4
    budget = max(_VMEM_BUDGET_BYTES - weight_bytes, 8 * per_row)
    tb = min(block_b, budget // per_row)
    # v7x megacore: keep >=2 grid steps so both TensorCores get work.
    tb = min(tb, _round_up(pl.cdiv(B, 2), 8))
    tb = max(8, (tb // 8) * 8)  # f32 sublane tiling
    return tb


@partial(jax.jit, static_argnames=("block_b",))
def sentiment_ann_forward(x, kp, block_b=4096):
    """x: [B, D] float32. kp: output of prepare_params."""
    B, D = x.shape
    w1, b1 = kp["w1"], kp["b1"]
    w2, b2 = kp["w2"], kp["b2"]
    w3, b3 = kp["w3"], kp["b3"]
    n_out = w3.shape[1]

    TB = _choose_batch_tile(B, D, block_b)
    grid = (pl.cdiv(B, TB),)

    flops = 2 * B * (D * 64 + 64 * 32 + 32 * n_out)
    bytes_accessed = (
        B * D * 4                       # x (native f32, single HBM pass)
        + D * 64 * 2 + 64 * 4           # w1 (bf16), b1
        + 64 * 32 * 4 + 32 * 4          # w2, b2
        + 32 * n_out * 4 + n_out * 4    # w3, b3
        + B * n_out * 4                 # out
    )

    pinned = lambda shape: pl.BlockSpec(shape, lambda i, s=len(shape): (0,) * s)

    out = pl.pallas_call(
        sentiment_ann_kernel,
        out_shape=jax.ShapeDtypeStruct((B, n_out), jnp.float32),
        grid_spec=pltpu.PrefetchScalarGridSpec(
            num_scalar_prefetch=0,
            grid=grid,
            in_specs=[
                pl.BlockSpec((TB, D), lambda i: (i, 0)),   # x: streamed per tile
                pinned(w1.shape), pinned(b1.shape),        # weights: VMEM-resident
                pinned(w2.shape), pinned(b2.shape),
                pinned(w3.shape), pinned(b3.shape),
            ],
            out_specs=pl.BlockSpec((TB, n_out), lambda i: (i, 0)),
        ),
        compiler_params=pltpu.CompilerParams(
            dimension_semantics=("parallel",)),            # v7x megacore sharding
        cost_estimate=pl.CostEstimate(
            flops=flops, bytes_accessed=bytes_accessed, transcendentals=0),
    )(x, w1, b1, w2, b2, w3, b3)

    return out


def init_params(key, input_size):
    """Deterministic synthetic parameters, shapes as in SentimentANN.__init__."""
    ks = jax.random.split(key, 6)

    def lin(kw, kb, fan_in, fan_out):
        bound = 1.0 / jnp.sqrt(fan_in)
        w = jax.random.uniform(kw, (fan_out, fan_in), jnp.float32, -bound, bound)
        b = jax.random.uniform(kb, (fan_out,), jnp.float32, -bound, bound)
        return w, b

    w1, b1 = lin(ks[0], ks[1], input_size, 64)
    w2, b2 = lin(ks[2], ks[3], 64, 32)
    w3, b3 = lin(ks[4], ks[5], 32, 2)
    return {"w1": w1, "b1": b1, "w2": w2, "b2": b2, "w3": w3, "b3": b3}


def reference_forward(x, params):
    """Pure-JAX reference matching the kernel's numerics (bf16-rounded x, w1)."""
    xb = x.astype(jnp.bfloat16).astype(jnp.float32)
    w1b = params["w1"].astype(jnp.bfloat16).astype(jnp.float32)
    h = jnp.maximum(xb @ w1b.T + params["b1"], 0.0)
    h = jnp.maximum(h @ params["w2"].T + params["b2"], 0.0)
    return h @ params["w3"].T + params["b3"]


if __name__ == "__main__":
    key = jax.random.PRNGKey(0)
    k_x, k_p = jax.random.split(key)

    batch = 8
    input_size = 128  # feature dim of the bag-of-words / embedding input
    x = jax.random.normal(k_x, (batch, input_size), dtype=jnp.float32)
    params = init_params(k_p, input_size)
    kparams = prepare_params(params)  # one-time layout conversion

    out = sentiment_ann_forward(x, kparams)
    out = jax.block_until_ready(out)
    ref = reference_forward(x, params)
    assert out.shape == (batch, 2)
    assert jnp.allclose(out, ref, atol=1e-3, rtol=1e-3), (
        float(jnp.max(jnp.abs(out - ref))))

    # Exercise the partial-boundary-block path (B not a multiple of the tile).
    x2 = jax.random.normal(k_x, (6, input_size), dtype=jnp.float32)
    out2 = jax.block_until_ready(sentiment_ann_forward(x2, kparams))
    ref2 = reference_forward(x2, params)
    assert out2.shape == (6, 2)
    assert jnp.allclose(out2, ref2, atol=1e-3, rtol=1e-3), (
        float(jnp.max(jnp.abs(out2 - ref2))))

    print("KERNEL_OK")
</pallas_src>

<mosaic_0001>
module attributes {stable_mosaic.version = 11 : i64} {
  func.func @sentiment_ann_kernel(%arg0: i32, %arg1: memref<8x128xf32, #tpu.memory_space<vmem>>, %arg2: memref<128x64xbf16, #tpu.memory_space<vmem>>, %arg3: memref<1x64xf32, #tpu.memory_space<vmem>>, %arg4: memref<64x32xf32, #tpu.memory_space<vmem>>, %arg5: memref<1x32xf32, #tpu.memory_space<vmem>>, %arg6: memref<32x2xf32, #tpu.memory_space<vmem>>, %arg7: memref<1x2xf32, #tpu.memory_space<vmem>>, %arg8: memref<8x2xf32, #tpu.memory_space<vmem>>) attributes {dimension_semantics = [#tpu.dimension_semantics<parallel>], iteration_bounds = array<i64: 1>, scalar_prefetch = 0 : i64, scratch_operands = 0 : i64, tpu.core_type = #tpu.core_type<tc>, window_params = [{transform_indices = @transform_0, window_bounds = array<i64: 8, 128>}, {pipeline_mode = #tpu.pipeline_mode<synchronous>, transform_indices = @transform_1, window_bounds = array<i64: 128, 64>}, {pipeline_mode = #tpu.pipeline_mode<synchronous>, transform_indices = @transform_2, window_bounds = array<i64: 1, 64>}, {pipeline_mode = #tpu.pipeline_mode<synchronous>, transform_indices = @transform_3, window_bounds = array<i64: 64, 32>}, {pipeline_mode = #tpu.pipeline_mode<synchronous>, transform_indices = @transform_4, window_bounds = array<i64: 1, 32>}, {pipeline_mode = #tpu.pipeline_mode<synchronous>, transform_indices = @transform_5, window_bounds = array<i64: 32, 2>}, {pipeline_mode = #tpu.pipeline_mode<synchronous>, transform_indices = @transform_6, window_bounds = array<i64: 1, 2>}, {transform_indices = @transform_7, window_bounds = array<i64: 8, 2>}]} {
    %c0 = arith.constant 0 : index
    %c0_0 = arith.constant 0 : index
    %0 = vector.load %arg1[%c0, %c0_0] : memref<8x128xf32, #tpu.memory_space<vmem>>, vector<8x128xf32>
    %1 = arith.truncf %0 : vector<8x128xf32> to vector<8x128xbf16>
    %c0_1 = arith.constant 0 : index
    %c0_2 = arith.constant 0 : index
    %2 = vector.load %arg2[%c0_1, %c0_2] : memref<128x64xbf16, #tpu.memory_space<vmem>>, vector<128x64xbf16>
    %cst = arith.constant dense<0.000000e+00> : vector<8x64xf32>
    %3 = tpu.matmul %1, %2, %cst {dimension_numbers = #tpu.dot_dimension_numbers<[1], [0], [0], [1], [0, 0, 1, 1], [], []>} : vector<8x128xbf16>, vector<128x64xbf16>, vector<8x64xf32> -> vector<8x64xf32>
    %c0_3 = arith.constant 0 : index
    %c0_4 = arith.constant 0 : index
    %4 = vector.load %arg3[%c0_3, %c0_4] : memref<1x64xf32, #tpu.memory_space<vmem>>, vector<1x64xf32>
    %5 = vector.broadcast %4 : vector<1x64xf32> to vector<8x64xf32>
    %6 = arith.addf %3, %5 : vector<8x64xf32>
    %cst_5 = arith.constant 0.000000e+00 : f32
    %7 = vector.broadcast %cst_5 : f32 to vector<8x64xf32>
    %8 = arith.maximumf %6, %7 : vector<8x64xf32>
    %c0_6 = arith.constant 0 : index
    %c0_7 = arith.constant 0 : index
    %9 = vector.load %arg4[%c0_6, %c0_7] : memref<64x32xf32, #tpu.memory_space<vmem>>, vector<64x32xf32>
    %cst_8 = arith.constant dense<0.000000e+00> : vector<8x32xf32>
    %10 = tpu.matmul %8, %9, %cst_8 {dimension_numbers = #tpu.dot_dimension_numbers<[1], [0], [0], [1], [0, 0, 1, 1], [], []>} : vector<8x64xf32>, vector<64x32xf32>, vector<8x32xf32> -> vector<8x32xf32>
    %c0_9 = arith.constant 0 : index
    %c0_10 = arith.constant 0 : index
    %11 = vector.load %arg5[%c0_9, %c0_10] : memref<1x32xf32, #tpu.memory_space<vmem>>, vector<1x32xf32>
    %12 = vector.broadcast %11 : vector<1x32xf32> to vector<8x32xf32>
    %13 = arith.addf %10, %12 : vector<8x32xf32>
    %cst_11 = arith.constant 0.000000e+00 : f32
    %14 = vector.broadcast %cst_11 : f32 to vector<8x32xf32>
    %15 = arith.maximumf %13, %14 : vector<8x32xf32>
    %c0_12 = arith.constant 0 : index
    %c0_13 = arith.constant 0 : index
    %16 = vector.load %arg6[%c0_12, %c0_13] : memref<32x2xf32, #tpu.memory_space<vmem>>, vector<32x2xf32>
    %cst_14 = arith.constant dense<0.000000e+00> : vector<8x2xf32>
    %17 = tpu.matmul %15, %16, %cst_14 {dimension_numbers = #tpu.dot_dimension_numbers<[1], [0], [0], [1], [0, 0, 1, 1], [], []>} : vector<8x32xf32>, vector<32x2xf32>, vector<8x2xf32> -> vector<8x2xf32>
    %c0_15 = arith.constant 0 : index
    %c0_16 = arith.constant 0 : index
    %18 = vector.load %arg7[%c0_15, %c0_16] : memref<1x2xf32, #tpu.memory_space<vmem>>, vector<1x2xf32>
    %19 = vector.broadcast %18 : vector<1x2xf32> to vector<8x2xf32>
    %20 = arith.addf %17, %19 : vector<8x2xf32>
    %c0_17 = arith.constant 0 : index
    %c0_18 = arith.constant 0 : index
    %21 = vector.load %arg8[%c0_17, %c0_18] : memref<8x2xf32, #tpu.memory_space<vmem>>, vector<8x2xf32>
    tpu.vector_store %arg8[%c0_17, %c0_18], %20 {strides = array<i32>} : memref<8x2xf32, #tpu.memory_space<vmem>>, vector<8x2xf32>,
    return
  }
  func.func @transform_0(%arg0: i32) -> (i32, i32) {
    %c0_i32 = arith.constant 0 : i32
    %c0_i32_0 = arith.constant 0 : i32
    return %arg0, %c0_i32 : i32, i32
  }
  func.func @transform_1(%arg0: i32) -> (i32, i32) {
    %c0_i32 = arith.constant 0 : i32
    %c0_i32_0 = arith.constant 0 : i32
    %c0_i32_1 = arith.constant 0 : i32
    return %c0_i32, %c0_i32_0 : i32, i32
  }
  func.func @transform_2(%arg0: i32) -> (i32, i32) {
    %c0_i32 = arith.constant 0 : i32
    %c0_i32_0 = arith.constant 0 : i32
    %c0_i32_1 = arith.constant 0 : i32
    return %c0_i32, %c0_i32_0 : i32, i32
  }
  func.func @transform_3(%arg0: i32) -> (i32, i32) {
    %c0_i32 = arith.constant 0 : i32
    %c0_i32_0 = arith.constant 0 : i32
    %c0_i32_1 = arith.constant 0 : i32
    return %c0_i32, %c0_i32_0 : i32, i32
  }
  func.func @transform_4(%arg0: i32) -> (i32, i32) {
    %c0_i32 = arith.constant 0 : i32
    %c0_i32_0 = arith.constant 0 : i32
    %c0_i32_1 = arith.constant 0 : i32
    return %c0_i32, %c0_i32_0 : i32, i32
  }
  func.func @transform_5(%arg0: i32) -> (i32, i32) {
    %c0_i32 = arith.constant 0 : i32
    %c0_i32_0 = arith.constant 0 : i32
    %c0_i32_1 = arith.constant 0 : i32
    return %c0_i32, %c0_i32_0 : i32, i32
  }
  func.func @transform_6(%arg0: i32) -> (i32, i32) {
    %c0_i32 = arith.constant 0 : i32
    %c0_i32_0 = arith.constant 0 : i32
    %c0_i32_1 = arith.constant 0 : i32
    return %c0_i32, %c0_i32_0 : i32, i32
  }
  func.func @transform_7(%arg0: i32) -> (i32, i32) {
    %c0_i32 = arith.constant 0 : i32
    %c0_i32_0 = arith.constant 0 : i32
    return %arg0, %c0_i32 : i32, i32
  }
}

</mosaic_0001>

<bundles_post_ra>
// kernel: sentiment_ann_forward.1
= control target key start
LH: loop header
LB: loop body
LE: loop exit
PB: predicated region body
PF: predicated region fallthrough
CT: control target
= control target key end

     0   :  { %v437_v0 = vmov 0.0   ;;  %vm438_vm0 = vmmov 0   ;;  %v439_v2 = vmov 0.0|0.0   ;;  %vm156_vm1 = vcmask 523264   ;;  %s575_s1 = inlined_call_operand.vmem [shape: bf16[128,64], index: 1, kind: input, shape index: {}]   ;;  %s576_s3 = inlined_call_operand.vmem [shape: f32[64,32], index: 3, kind: input, shape index: {}]   ;;  %s577_s0 = inlined_call_operand.vmem [shape: f32[8,128], index: 0, kind: input, shape index: {}]   ;;  %s578_s2 = inlined_call_operand.vmem [shape: f32[1,64], index: 2, kind: input, shape index: {}]   ;;  %s579_s5 = inlined_call_operand.vmem [shape: f32[32,2], index: 5, kind: input, shape index: {}]   ;;  %s580_s4 = inlined_call_operand.vmem [shape: f32[1,32], index: 4, kind: input, shape index: {}]   ;;  %s581_s6 = inlined_call_operand.vmem [shape: f32[1,2], index: 6, kind: input, shape index: {}]   ;;  %s582_s7 = inlined_call_operand.vmem [shape: f32[8,2], index: 7, kind: output, shape index: {}]  }
   0x1   :  { %358 = vmatprep.subr.bf16.mxu0 %v437_v0  ;;  %v429_v1 = vld [vmem:[%s575_s1] sm:$0xff]   ;;  %374 = vmatprep.mubr.msk.bf16.mxu0 %vm438_vm0, %v437_v0  ;;  %v430_v3 = vld [vmem:[%s575_s1 + $0x8] sm:$0xff]   ;;  %v431_v4 = vld [vmem:[%s575_s1 + $0x10] sm:$0xff]   ;;  %vm242_vm2 = vcmask 261120   ;;  %vm316_vm3 = vcmask 15360  }
   0x2   :  { %408 = vmatprep.subr.bf16.mxu1 %v439_v2  ;;  %394 = vmatprep.mubr.msk.f32.mxu1 %vm438_vm0, %v437_v0  ;;  %v141_v5 = vld [vmem:[%s576_s3] sm:$0xff]  ;;  %v142_v6 = vld [vmem:[%s576_s3 + $0x8] sm:$0xff]  ;;  %v143_v8 = vld [vmem:[%s576_s3 + $0x10] sm:$0xff] }
   0x3   :  { %359 = vmatpush3.bf16.msra.mxu0 %v429_v1  ;;  %v409_v7 = vpack.c.bf16 %v142_v6, %v141_v5  ;;  %v144_v9 = vld [vmem:[%s576_s3 + $0x18] sm:$0xff]  ;;  %v145_v12 = vld [vmem:[%s576_s3 + $0x20] sm:$0xff]  ;;  %v146_v13 = vld [vmem:[%s576_s3 + $0x28] sm:$0xff] }
   0x4   :  { %360 = vmatprep.subr.bf16.mxu0 %v437_v0  ;;  %v432_v10 = vld [vmem:[%s575_s1 + $0x18] sm:$0xff]   ;;  %v412_v11 = vpack.c.bf16 %v144_v9, %v143_v8  ;;  %v433_v14 = vld [vmem:[%s575_s1 + $0x20] sm:$0xff]   ;;  %v415_v15 = vpack.c.bf16 %v146_v13, %v145_v12  ;;  %v434_v16 = vld [vmem:[%s575_s1 + $0x28] sm:$0xff]  }
   0x5   :  { %410 = vmatpush3.bf16.msra.mxu1 %v409_v7  ;;  %v435_v17 = vld [vmem:[%s575_s1 + $0x30] sm:$0xff]   ;;  %v436_v18 = vld [vmem:[%s575_s1 + $0x38] sm:$0xff]   ;;  %v27_v19 = vld [vmem:[%s577_s0] sm:$0xff] }
   0x6   :  { %411 = vmatprep.subr.bf16.mxu1 %v439_v2  ;;  %v28_v20 = vpack.c.bf16 %v27_v19, %v27_v19  ;;  %v147_v21 = vld [vmem:[%s576_s3 + $0x30] sm:$0xff]  ;;  %v148_v22 = vld [vmem:[%s576_s3 + $0x38] sm:$0xff]  ;;  %v322_v24 = vld [vmem:[%s578_s2] ss:$0 sm:$0xff] }
   0x7   :  { %361 = vmatpush3.bf16.msra.mxu0 %v430_v3  ;;  %v418_v23 = vpack.c.bf16 %v148_v22, %v147_v21  ;;  %v231_v25 = vld [vmem:[%s579_s5] sm:$0xff]  ;;  %v232_v26 = vld [vmem:[%s579_s5 + $0x8] sm:$0xff]  ;;  %v233_v34 = vld [vmem:[%s579_s5 + $0x10] sm:$0xff] }
   0x8   :  { %362 = vmatprep.subr.bf16.mxu0 %v437_v0  ;;  %v421_v31 = vpack.c.bf16 %v232_v26, %v231_v25  ;;  %v234_v35 = vld [vmem:[%s579_s5 + $0x18] sm:$0xff]  ;;  %v331_v37 = vld [vmem:[%s580_s4] ss:$0 sm:$0xff] }
   0x9   :  { %413 = vmatpush3.bf16.msra.mxu1 %v412_v11  ;;  %v424_v36 = vpack.c.bf16 %v234_v35, %v233_v34  ;;  %v333_v42 = vld [vmem:[%s581_s6] ss:$0 sm:$0xff] }
   0xa   :  { %414 = vmatprep.subr.bf16.mxu1 %v439_v2 }
   0xb   :  { %363 = vmatpush3.bf16.msra.mxu0 %v431_v4 }
   0xc   :  { %364 = vmatprep.subr.bf16.mxu0 %v437_v0 }
   0xd   :  { %416 = vmatpush3.bf16.msra.mxu1 %v415_v15 }
   0xe   :  { %417 = vmatprep.subr.bf16.mxu1 %v439_v2 }
   0xf   :  { %365 = vmatpush3.bf16.msra.mxu0 %v432_v10 }
  0x10   :  { %366 = vmatprep.subr.bf16.mxu0 %v437_v0 }
  0x11   :  { %419 = vmatpush3.bf16.msra.mxu1 %v418_v23 }
  0x12   :  { %420 = vmatprep.subr.bf16.mxu1 %v439_v2 }
  0x13   :  { %367 = vmatpush3.bf16.msra.mxu0 %v433_v14 }
  0x14   :  { %368 = vmatprep.subr.bf16.mxu0 %v437_v0 }
  0x17   :  { %369 = vmatpush3.bf16.msra.mxu0 %v434_v16 }
  0x18   :  { %370 = vmatprep.subr.bf16.mxu0 %v437_v0 }
  0x1b   :  { %371 = vmatpush3.bf16.msra.mxu0 %v435_v17 }
  0x1c   :  { %372 = vmatprep.subr.bf16.mxu0 %v437_v0 }
  0x1f   :  { %373 = vmatpush3.bf16.msra.mxu0 %v436_v18 }
  0x22   :  { %375 = vmatmul.mubr.bf16.vlgmr.msra.gmra.mrb[0].mxu0 %v28_v20 }
  0xf5   :  { %v134_v27 = vpop.f32.mrb[0].mxu0 }
  0xf6   :  { %v135_v28 = vadd.f32 %v322_v24, %v134_v27  ;;  %v376_v29 = vpop.f32.mrb[1].mxu0 }
  0xf7   :  { %v137_v30 = vpop.f32.mrb[2].mxu0 }
  0xf8   :  { %v140_v32 = vmax.f32 %v135_v28, 0.0  ;;  %v377_v33 = vpop.f32.mrb[3].mxu0 }
  0xfa   :  { %395 = vmatmul.mubr.msk.f32.vlgmr.msra.gmra.mrb[0].mxu1 %vm156_vm1, %v140_v32 }
  0xfb   :  { %422 = vmatpush3.bf16.msra.mxu1 %v421_v31  ;;  %405 = vmatprep.mubr.msk.f32.mxu1 %vm438_vm0, %v437_v0 }
  0xfc   :  { %423 = vmatprep.subr.bf16.mxu1 %v439_v2 }
  0xff   :  { %425 = vmatpush3.bf16.msra.mxu1 %v424_v36 }
 0x1cd   :  { %v226_v38 = vpop.f32.mrb[0].mxu1 }
 0x1ce   :  { %v227_v39 = vadd.f32 %v331_v37, %v226_v38  ;;  %v396_v40 = vpop.f32.mrb[1].mxu1 }
 0x1d0   :  { %v230_v41 = vmax.f32 %v227_v39, 0.0 }
 0x1d2   :  { %406 = vmatmul.mubr.msk.f32.vlgmr.msra.gmra.mrb[2].mxu1 %vm242_vm2, %v230_v41 }
 0x2a5   :  { %v312_v43 = vpop.f32.mrb[2].mxu1 }
 0x2a6   :  { %v313_v44 = vadd.f32 %v333_v42, %v312_v43  ;;  %v407_v45 = vpop.f32.mrb[3].mxu1 }
 0x2a8   :  { %317 = vst.msk [vmem:[%s582_s7] sm:$0xff] %vm316_vm3, %v313_v44 }

</bundles_post_ra>
